<compile_context>
chip_gen: v5e
topology: v5e:2x2
jax: 0.10.0
libtpu: 0.0.40
codegen_flags: <defaults>
</compile_context>

<pallas_src>
import functools

import jax
import jax.numpy as jnp
from jax.experimental import pallas as pl
from jax.experimental.pallas import tpu as pltpu


def _round_up(x, m):
    return ((x + m - 1) // m) * m


def _wce_kernel(x_ref, cls_ref, w_ref, o_ref):
    # x_ref:   (C, T) logits          (classes on sublanes, anchors on lanes)
    # cls_ref: (1, T) int32 target class index per anchor
    # w_ref:   (1, T) anchor weights
    # o_ref:   (1, T) weighted CE loss (lane-dense store)
    x = x_ref[...]
    cls = cls_ref[...]
    w = w_ref[...]

    # Logit at the target class: fully vectorized select (no gather).
    idx = jax.lax.broadcasted_iota(jnp.int32, x.shape, 0)               # (C, T)
    picked = jnp.sum(jnp.where(idx == cls, x, 0.0), axis=0, keepdims=True)  # (1, T)

    # Numerically stable logsumexp over the class (sublane) axis.
    x_max = jnp.max(x, axis=0, keepdims=True)                           # (1, T)
    lse = jnp.log(jnp.sum(jnp.exp(x - x_max), axis=0, keepdims=True)) + x_max

    o_ref[...] = (lse - picked) * w


@functools.partial(jax.jit, static_argnames=("block_anchors",))
def weighted_cross_entropy_loss(logits, target, weights, *, block_anchors=32768):
    """Pallas equivalent of WeightedCrossEntropyLoss.forward.

    logits:  (B, A, C) float logits
    target:  (B, A, C) float one-hot targets
    weights: (B, A)    float anchor weights
    returns: (B, A)    float32 weighted cross-entropy loss (no reduction)
    """
    logits = jnp.asarray(logits, jnp.float32)
    weights = jnp.asarray(weights, jnp.float32)

    B, A, C = logits.shape
    N = B * A

    # torch: target.argmax(dim=-1) (first maximal index) — done once here so the
    # kernel never has to stream the (N, C) one-hot tensor.
    cls = jnp.argmax(target, axis=-1).astype(jnp.int32).reshape(1, N)

    # Lane-dense layout: classes on sublanes, anchors on lanes.  This is the
    # single remaining materialized transpose; the reshape of weights/cls is free.
    x = logits.reshape(N, C).T          # (C, N)
    w = weights.reshape(1, N)

    # Pad anchors only up to a multiple of 128 (lane width); padded lanes carry
    # zero logits / zero weights and are sliced away at the end.
    n_pad = _round_up(N, 128)
    pad = n_pad - N
    if pad:
        x = jnp.pad(x, ((0, 0), (0, pad)))
        cls = jnp.pad(cls, ((0, 0), (0, pad)))
        w = jnp.pad(w, ((0, 0), (0, pad)))

    # Tile selection: large lane-dense blocks, but keep >= 2 grid steps when
    # possible so both v7x TensorCores get work ("parallel" grid axis).
    if n_pad <= 128:
        tile = n_pad
    else:
        tile = min(_round_up(block_anchors, 128),
                   _round_up(pl.cdiv(n_pad, 2), 128))
        tile = max(128, min(tile, n_pad))

    grid = (pl.cdiv(n_pad, tile),)      # ragged last block handled by Pallas

    cost = pl.CostEstimate(
        flops=int(8 * N * C),
        transcendentals=int(N * (C + 1)),
        bytes_accessed=int(4 * (N * C + 3 * N)),
    )

    out = pl.pallas_call(
        _wce_kernel,
        out_shape=jax.ShapeDtypeStruct((1, n_pad), jnp.float32),
        grid=grid,
        in_specs=[
            pl.BlockSpec((C, tile), lambda i: (0, i)),   # logits block
            pl.BlockSpec((1, tile), lambda i: (0, i)),   # class-index block
            pl.BlockSpec((1, tile), lambda i: (0, i)),   # weights block
        ],
        out_specs=pl.BlockSpec((1, tile), lambda i: (0, i)),
        compiler_params=pltpu.CompilerParams(dimension_semantics=("parallel",)),
        cost_estimate=cost,
    )(x, cls, w)

    return out[0, :N].reshape(B, A)


def _reference_loss(logits, target, weights):
    """Pure-JAX reference mirroring the PyTorch module."""
    logp = jax.nn.log_softmax(logits.astype(jnp.float32), axis=-1)
    cls = jnp.argmax(target, axis=-1)
    nll = -jnp.take_along_axis(logp, cls[..., None], axis=-1)[..., 0]
    return nll * weights.astype(jnp.float32)


if __name__ == "__main__":
    key = jax.random.PRNGKey(0)
    B, A, C = 2, 100, 4   # small, non-multiple-of-128 anchor count to exercise the ragged path

    k1, k2, k3 = jax.random.split(key, 3)
    logits = jax.random.normal(k1, (B, A, C), dtype=jnp.float32) * 3.0
    classes = jax.random.randint(k2, (B, A), 0, C, dtype=jnp.int32)
    target = jax.nn.one_hot(classes, C, dtype=jnp.float32)
    weights = jax.random.uniform(k3, (B, A), dtype=jnp.float32)

    loss = weighted_cross_entropy_loss(logits, target, weights)
    loss = jax.block_until_ready(loss)

    ref = _reference_loss(logits, target, weights)
    assert loss.shape == (B, A), loss.shape
    assert jnp.allclose(loss, ref, rtol=1e-5, atol=1e-5), (loss, ref)

    print("KERNEL_OK")
</pallas_src>

<mosaic_0001>
module attributes {stable_mosaic.version = 11 : i64} {
  func.func @_wce_kernel(%arg0: i32, %arg1: memref<4x128xf32, #tpu.memory_space<vmem>>, %arg2: memref<1x128xi32, #tpu.memory_space<vmem>>, %arg3: memref<1x128xf32, #tpu.memory_space<vmem>>, %arg4: memref<1x128xf32, #tpu.memory_space<vmem>>) attributes {dimension_semantics = [#tpu.dimension_semantics<parallel>], iteration_bounds = array<i64: 2>, scalar_prefetch = 0 : i64, scratch_operands = 0 : i64, tpu.core_type = #tpu.core_type<tc>, window_params = [{transform_indices = @transform_0, window_bounds = array<i64: 4, 128>}, {transform_indices = @transform_1, window_bounds = array<i64: 1, 128>}, {transform_indices = @transform_2, window_bounds = array<i64: 1, 128>}, {transform_indices = @transform_3, window_bounds = array<i64: 1, 128>}]} {
    %c0 = arith.constant 0 : index
    %c0_0 = arith.constant 0 : index
    %0 = vector.load %arg1[%c0, %c0_0] : memref<4x128xf32, #tpu.memory_space<vmem>>, vector<4x128xf32>
    %c0_1 = arith.constant 0 : index
    %c0_2 = arith.constant 0 : index
    %1 = vector.load %arg2[%c0_1, %c0_2] : memref<1x128xi32, #tpu.memory_space<vmem>>, vector<1x128xi32>
    %c0_3 = arith.constant 0 : index
    %c0_4 = arith.constant 0 : index
    %2 = vector.load %arg3[%c0_3, %c0_4] : memref<1x128xf32, #tpu.memory_space<vmem>>, vector<1x128xf32>
    %3 = tpu.iota {dimensions = array<i32: 0>} : vector<4x128xi32>
    %4 = vector.broadcast %1 : vector<1x128xi32> to vector<4x128xi32>
    %5 = arith.cmpi eq, %3, %4 : vector<4x128xi32>
    %cst = arith.constant 0.000000e+00 : f32
    %6 = vector.broadcast %cst : f32 to vector<4x128xf32>
    %7 = arith.select %5, %0, %6 : vector<4x128xi1>, vector<4x128xf32>
    %cst_5 = arith.constant dense<0.000000e+00> : vector<128xf32>
    %8 = vector.multi_reduction <add>, %7, %cst_5 [0] : vector<4x128xf32> to vector<128xf32>
    %9 = vector.shape_cast %8 : vector<128xf32> to vector<1x128xf32>
    %cst_6 = arith.constant dense<0xFF800000> : vector<128xf32>
    %10 = vector.multi_reduction <maximumf>, %0, %cst_6 [0] : vector<4x128xf32> to vector<128xf32>
    %11 = vector.shape_cast %10 : vector<128xf32> to vector<1x128xf32>
    %12 = vector.broadcast %11 : vector<1x128xf32> to vector<4x128xf32>
    %13 = arith.subf %0, %12 : vector<4x128xf32>
    %14 = math.exp %13 : vector<4x128xf32>
    %cst_7 = arith.constant dense<0.000000e+00> : vector<128xf32>
    %15 = vector.multi_reduction <add>, %14, %cst_7 [0] : vector<4x128xf32> to vector<128xf32>
    %16 = vector.shape_cast %15 : vector<128xf32> to vector<1x128xf32>
    %17 = math.log %16 : vector<1x128xf32>
    %18 = arith.addf %17, %11 : vector<1x128xf32>
    %19 = arith.subf %18, %9 : vector<1x128xf32>
    %20 = arith.mulf %19, %2 : vector<1x128xf32>
    %c0_8 = arith.constant 0 : index
    %c0_9 = arith.constant 0 : index
    %21 = vector.load %arg4[%c0_8, %c0_9] : memref<1x128xf32, #tpu.memory_space<vmem>>, vector<1x128xf32>
    tpu.vector_store %arg4[%c0_8, %c0_9], %20 {strides = array<i32>} : memref<1x128xf32, #tpu.memory_space<vmem>>, vector<1x128xf32>,
    return
  }
  func.func @transform_0(%arg0: i32) -> (i32, i32) {
    %c0_i32 = arith.constant 0 : i32
    %c0_i32_0 = arith.constant 0 : i32
    return %c0_i32, %arg0 : i32, i32
  }
  func.func @transform_1(%arg0: i32) -> (i32, i32) {
    %c0_i32 = arith.constant 0 : i32
    %c0_i32_0 = arith.constant 0 : i32
    return %c0_i32, %arg0 : i32, i32
  }
  func.func @transform_2(%arg0: i32) -> (i32, i32) {
    %c0_i32 = arith.constant 0 : i32
    %c0_i32_0 = arith.constant 0 : i32
    return %c0_i32, %arg0 : i32, i32
  }
  func.func @transform_3(%arg0: i32) -> (i32, i32) {
    %c0_i32 = arith.constant 0 : i32
    %c0_i32_0 = arith.constant 0 : i32
    return %c0_i32, %arg0 : i32, i32
  }
}

</mosaic_0001>

<bundles_post_ra>
// kernel: squeeze.1
= control target key start
LH: loop header
LB: loop body
LE: loop exit
PB: predicated region body
PF: predicated region fallthrough
CT: control target
= control target key end

     0   :  { %s87_s0 = inlined_call_operand.vmem [shape: f32[200], index: 0, kind: input, shape index: {}]   ;;  %s88_s1 = inlined_call_operand.hbm [shape: f32[2,100], index: 1, kind: output, shape index: {}]  }
   0x1   :  { %v5_v0 = vld [vmem:[%s87_s0] sm:$0x3] }
   0x2   :  { %2 = vsyncpa [#allocation1], 0  ;;  %6 = vst [vmem:[#allocation3] sm:$0x3] %v5_v0  ;;  %vm8_vm0 = vcmask 818176   ;;  %s69_s0 = smov 28  }
   0x3   :  { %vm17_vm1 = vcmask 228352   ;;  %vm20_vm2 = vcmask 818400   ;;  %s70_s8 = smov [#allocation0]   ;;  %s34_s1 = sshll.u32 %s88_s1, 4  ;;  %s35_s1 = int_to_ptr.hbm [resolvable:$true] %s34_s1 }
   0x4   :  { %s32_s9 = sshll.u32 %s70_s8, 4  ;;  %s33_s9 = int_to_ptr.vmem [resolvable:$true] %s32_s9 }
   0x9   :  { %v7_v1 = vld [vmem:[#allocation3] sm:$0x1]   ;;  %v12_v3 = vld [vmem:[#allocation3 + $0x1] sm:$0x1]  }
   0xa   :  { %v10_v2 = vld [vmem:[#allocation3] sm:$0x1]   ;;  %9 = vst.msk [vmem:[#allocation2] sm:$0x1] %vm8_vm0, %v7_v1  }
   0xb   :  { %v14_v4 = vsel %vm8_vm0, %v12_v3, %v10_v2 }
   0xc   :  { %15 = vrot.lane.b32.xlu0 %v14_v4, %s69_s0 }
  0x7e   :  { %v16_v5 = vpop.permute.xlu0 %15  }
  0x7f   :  { %19 = vst.msk [vmem:[#allocation2 + $0x1] sm:$0x1] %vm17_vm1, %v16_v5  }
  0x80   :  { %22 = vst.msk [vmem:[#allocation2 + $0x1] sm:$0x1] %vm20_vm2, %v16_v5  }
  0x87   :  { %v25_v6 = vld [vmem:[#allocation2] sm:$0x3] }
  0x88   :  { %28 = vst [vmem:[#allocation0] sm:$0x3] %v25_v6 }
  0x89   :  { %37 = dma.vmem_to_hbm [thread:$0]  %s33_s9, 32, %s35_s1, [#allocation1]  }
  0x8a   :  { %67 = dma.done.wait [#allocation1], 32  }
  0x8b   :  { %68 = vsyncadd [#allocation1], 4294967264 }
  0x8c   :  { %40 = vsyncpa [#allocation1], 1 }

// kernel: weighted_cross_entropy_loss.1
= control target key start
LH: loop header
LB: loop body
LE: loop exit
PB: predicated region body
PF: predicated region fallthrough
CT: control target
= control target key end

     0   :  { %s345_s12 = smov 0   ;;  %s377_s0 = inlined_call_operand.vmem [shape: f32[4,256], index: 0, kind: input, shape index: {}]   ;;  %s378_s1 = inlined_call_operand.vmem [shape: s32[1,256], index: 1, kind: input, shape index: {}]   ;;  %s379_s2 = inlined_call_operand.vmem [shape: f32[1,256], index: 2, kind: input, shape index: {}]   ;;  %s380_s3 = inlined_call_operand.vmem [shape: f32[1,256], index: 3, kind: output, shape index: {}]  }
   0x1 LB: > { %s296_s13 = sadd.s32 4294967295, %s323_s12   ;;  %p300_p0 = scmp.ge.s32.totalorder %s323_s12, 1  ;;  %s323_s12 = sphi %s345_s12, %s13_s12  }
   0x2   : > { %p152_p1 = scmp.lt.s32.totalorder %s323_s12, 3 }
   0x4   : > { %p153_p2 = pnand %p300_p0, %p152_p1 }
   0x5   : > { %p179_p3 = scmp.lt.s32.totalorder (!%p153_p2), %s296_s13, 1 }
   0x6   : > { %156 = sbr.rel (%p153_p2) target bundleno = 68 (0x44), region = 32 }
   0xb   : > { %s382_s13 = smov (!%p179_p3, %s296_s13), 1  ;;  %vm200_vm0 = vcmask 1043456   ;;  %v195_v5 = vlaneseq }
   0xc   : > { %s301_s14 = sshll.u32 %s382_s13, 2  ;;  %s185_s17 = scalar_lea.vmem %s378_s1, %s382_s13 }
   0xd   : > { %s182_s20 = scalar_lea.vmem %s377_s0, %s301_s14  ;;  %v196_v8 = vshrl.u32 %v195_v5, 7  ;;  %v312_v9 = vld [vmem:[%s185_s17] ss:$0 sm:$0xff]  ;;  %s188_s23 = scalar_lea.vmem %s379_s2, %s382_s13 }
   0xe   : > { %v192_v0 = vld [vmem:[%s182_s20] sm:$0xf]  ;;  %s191_s26 = scalar_lea.vmem %s380_s3, %s382_s13 }
   0xf   : > { %v208_v1 = vsel %vm200_vm0, %v192_v0, -inf  ;;  %vm198_vm1 = vcmp.eq.s32.totalorder %v196_v8, %v312_v9  ;;  %v194_v32 = vld [vmem:[%s188_s23] sm:$0x1] }
  0x10   : > { %v209_v2 = vrot.slane %v208_v1, 4  ;;  %v199_v13 = vsel %vm198_vm1, %v192_v0, 0.0 }
  0x11   : > { %v201_v14 = vsel %vm200_vm0, %v199_v13, 0.0 }
  0x12   : > { %v210_v3 = vmax.f32 %v208_v1, %v209_v2  ;;  %v202_v16 = vrot.slane %v201_v14, 4 }
  0x14   : > { %v211_v4 = vrot.slane %v210_v3, 2  ;;  %v203_v20 = vadd.f32 %v202_v16, %v201_v14 }
  0x16   : > { %v212_v6 = vmax.f32 %v210_v3, %v211_v4  ;;  %v204_v23 = vrot.slane %v203_v20, 2 }
  0x18   : > { %v213_v7 = vrot.slane %v212_v6, 1  ;;  %v205_v26 = vadd.f32 %v204_v23, %v203_v20 }
  0x1a   : > { %v214_v10 = vmax.f32 %v212_v6, %v213_v7  ;;  %v206_v27 = vrot.slane %v205_v26, 1 }
  0x1c   : > { %v215_v11 = vsub.f32 %v192_v0, %v214_v10  ;;  %v207_v29 = vadd.f32 %v206_v27, %v205_v26 }
  0x1e   : > { %v216_v12 = vmul.f32 1.442695, %v215_v11 }
  0x20   : > { %313 = vpow2.f32 %v216_v12 }
  0x26   : > { %v314_v15 = vpop.eup %313 }
  0x27   : > { %v218_v17 = vsel %vm200_vm0, %v314_v15, 0.0 }
  0x28   : > { %v219_v18 = vrot.slane %v218_v17, 4 }
  0x2a   : > { %v220_v19 = vadd.f32 %v219_v18, %v218_v17 }
  0x2c   : > { %v221_v21 = vrot.slane %v220_v19, 2 }
  0x2e   : > { %v222_v22 = vadd.f32 %v221_v21, %v220_v19 }
  0x30   : > { %v223_v24 = vrot.slane %v222_v22, 1 }
  0x32   : > { %v224_v25 = vadd.f32 %v223_v24, %v222_v22 }
  0x34   : > { %315 = vlog2.f32 %v224_v25 }
  0x3a   : > { %v316_v28 = vpop.eup %315 }
  0x3b   : > { %v226_v30 = vmul.f32 0.6931472, %v316_v28 }
  0x3d   : > { %v227_v31 = vadd.f32 %v226_v30, %v214_v10 }
  0x3f   : > { %v228_v33 = vsub.f32 %v227_v31, %v207_v29 }
  0x41   : > { %v229_v34 = vmul.f32 %v228_v33, %v194_v32 }
  0x43   : > { %230 = vst [vmem:[%s191_s26] sm:$0x1] %v229_v34 }
  0x44 PF: > { %s13_s12 = sadd.s32 1, %s323_s12  }
  0x45   : > { %p10_p4 = scmp.ge.s32.totalorder %s13_s12, 4  }
  0x47   :  { %12 = sbr.rel (!%p10_p4) target bundleno = 1 (0x1), region = 68 }

</bundles_post_ra>
